<compile_context>
chip_gen: v6e
topology: v6e:2x2x1
jax: 0.10.0
libtpu: 0.0.40
codegen_flags: <defaults>
</compile_context>

<pallas_src>
import math
import functools

import jax
import jax.numpy as jnp
from jax.experimental import pallas as pl
from jax.experimental.pallas import tpu as pltpu


# ----------------------------------------------------------------------------
# Pallas kernel: one grid step == one tile of TM timesteps.
# ----------------------------------------------------------------------------
def _timestep_embedder_kernel(
    t_ref,        # (TM, 1)      f32  timesteps for this tile
    freqs_ref,    # (1, F/2)     f32  sinusoid frequencies
    w1c_ref,      # (F/2, H)     cd   first Linear, rows matching cos(args)
    w1s_ref,      # (F/2, H)     cd   first Linear, rows matching sin(args)
    b1_ref,       # (1, H)       f32
    w2_ref,       # (H, H)       cd   second Linear
    b2_ref,       # (1, H)       f32
    o_ref,        # (TM, H)      f32
):
    cd = w1c_ref.dtype  # compute dtype for the MXU (f32 or bf16)

    # Sinusoidal embedding (args / sin / cos kept in f32; sin+cos on the EUP).
    t = t_ref[...]                      # (TM, 1)
    args = t * freqs_ref[...]           # (TM, F/2), broadcast over lanes
    cos_e = jnp.cos(args)
    sin_e = jnp.sin(args)

    # emb @ W1 with the cat([cos, sin]) folded into a row-split of W1.
    h = (jnp.dot(cos_e.astype(cd), w1c_ref[...],
                 preferred_element_type=jnp.float32)
         + jnp.dot(sin_e.astype(cd), w1s_ref[...],
                   preferred_element_type=jnp.float32)
         + b1_ref[...])                 # (TM, H) f32

    # SiLU in f32 (sigmoid -> EUP).
    h = h * jax.nn.sigmoid(h)

    out = (jnp.dot(h.astype(cd), w2_ref[...],
                   preferred_element_type=jnp.float32)
           + b2_ref[...])               # (TM, H) f32

    o_ref[...] = out.astype(o_ref.dtype)


# ----------------------------------------------------------------------------
# Wrapper: parameter prep + pallas_call.
# ----------------------------------------------------------------------------
@functools.partial(jax.jit, static_argnames=("tile_m", "compute_dtype"))
def timestep_embedder(t, params, *, tile_m=8, compute_dtype=jnp.float32):
    """t: (N,) scalar timesteps -> (N, H) embeddings."""
    (N,) = t.shape
    w1, b1, w2, b2 = params["w1"], params["b1"], params["w2"], params["b2"]
    F, H = w1.shape
    assert F % 2 == 0, "frequency_embedding_size must be even"
    half = F // 2

    # Constant frequency table (part of the module's forward, data-independent).
    freqs = jnp.exp(
        -math.log(10000.0) * jnp.arange(half, dtype=jnp.float32) / half
    ).reshape(1, half)

    # Fold cat([cos, sin]) into a row-split of W1; cast weights to the MXU
    # compute dtype (bf16 halves HBM traffic / VMEM; accumulation stays f32).
    w1c = w1[:half, :].astype(compute_dtype)
    w1s = w1[half:, :].astype(compute_dtype)
    w2c = w2.astype(compute_dtype)
    b1r = b1.reshape(1, H).astype(jnp.float32)
    b2r = b2.reshape(1, H).astype(jnp.float32)

    # Tile / pad the timestep axis to a multiple of tile_m.
    num_tiles = pl.cdiv(N, tile_m)
    n_pad = num_tiles * tile_m
    t2 = t.astype(jnp.float32).reshape(N, 1)
    if n_pad != N:
        t2 = jnp.pad(t2, ((0, n_pad - N), (0, 0)))

    # Explicit VMEM budget: resident weights (double-buffered) + tile slabs,
    # with generous headroom; well under the 64 MiB v7x physical budget.
    weight_bytes = (2 * half * H + H * H) * jnp.dtype(compute_dtype).itemsize
    act_bytes = tile_m * (2 * half + 2 * H) * 4
    vmem_limit = max(16 * 1024 * 1024, 4 * (weight_bytes + act_bytes))

    out = pl.pallas_call(
        _timestep_embedder_kernel,
        out_shape=jax.ShapeDtypeStruct((n_pad, H), jnp.float32),
        grid=(num_tiles,),
        in_specs=[
            pl.BlockSpec((tile_m, 1), lambda i: (i, 0)),   # t tile
            pl.BlockSpec((1, half), lambda i: (0, 0)),     # freqs   (resident)
            pl.BlockSpec((half, H), lambda i: (0, 0)),     # W1[:half]
            pl.BlockSpec((half, H), lambda i: (0, 0)),     # W1[half:]
            pl.BlockSpec((1, H), lambda i: (0, 0)),        # b1
            pl.BlockSpec((H, H), lambda i: (0, 0)),        # W2
            pl.BlockSpec((1, H), lambda i: (0, 0)),        # b2
        ],
        out_specs=pl.BlockSpec((tile_m, H), lambda i: (i, 0)),
        compiler_params=pltpu.CompilerParams(
            dimension_semantics=("parallel",),   # independent timestep tiles
            vmem_limit_bytes=int(vmem_limit),
        ),
    )(t2, freqs, w1c, w1s, b1r, w2c, b2r)

    return out[:N]


# ----------------------------------------------------------------------------
# Deterministic parameter init (shapes per the module's __init__).
# Weights stored as (in_features, out_features): y = x @ W + b.
# ----------------------------------------------------------------------------
def init_params(key, F, H):
    k1, k2, k3, k4 = jax.random.split(key, 4)
    w1 = jax.random.normal(k1, (F, H), jnp.float32) * (1.0 / math.sqrt(F))
    b1 = jax.random.normal(k2, (H,), jnp.float32) * 0.02
    w2 = jax.random.normal(k3, (H, H), jnp.float32) * (1.0 / math.sqrt(H))
    b2 = jax.random.normal(k4, (H,), jnp.float32) * 0.02
    return dict(w1=w1, b1=b1, w2=w2, b2=b2)


# ----------------------------------------------------------------------------
# Pure-JAX reference (mirrors the PyTorch forward) for validation.
# ----------------------------------------------------------------------------
def ref_forward(t, params):
    F = params["w1"].shape[0]
    half = F // 2
    freqs = jnp.exp(
        -math.log(10000.0) * jnp.arange(half, dtype=jnp.float32) / half)
    args = t.astype(jnp.float32)[:, None] * freqs[None, :]
    emb = jnp.concatenate([jnp.cos(args), jnp.sin(args)], axis=-1)
    h = emb @ params["w1"] + params["b1"]
    h = h * jax.nn.sigmoid(h)
    return h @ params["w2"] + params["b2"]


if __name__ == "__main__":
    # Small, lane-aligned test shapes consistent with the module:
    #   N timesteps = 16, hidden_size = 128, frequency_embedding_size = 512.
    N, H, F = 16, 128, 512
    key = jax.random.PRNGKey(0)
    kt, kp = jax.random.split(key)
    # Diffusion-style timesteps in [0, 1000).
    t = jax.random.uniform(kt, (N,), jnp.float32, minval=0.0, maxval=1000.0)
    params = init_params(kp, F, H)

    ref = ref_forward(t, params)

    # f32 compute path (tight tolerance).
    out = jax.block_until_ready(
        timestep_embedder(t, params, tile_m=8, compute_dtype=jnp.float32))
    assert out.shape == (N, H)
    err = float(jnp.max(jnp.abs(out - ref)))
    assert err < 5e-3, f"f32 path max abs error too large: {err}"

    # bf16 weight path (the perf-oriented MXU path; looser tolerance).
    out_bf = jax.block_until_ready(
        timestep_embedder(t, params, tile_m=8, compute_dtype=jnp.bfloat16))
    assert out_bf.shape == (N, H)
    err_bf = float(jnp.max(jnp.abs(out_bf - ref)))
    assert err_bf < 5e-2, f"bf16 path max abs error too large: {err_bf}"

    print("KERNEL_OK")
</pallas_src>

<mosaic_0001>
module attributes {stable_mosaic.version = 11 : i64} {
  func.func @_timestep_embedder_kernel(%arg0: i32, %arg1: memref<8x1xf32, #tpu.memory_space<vmem>>, %arg2: memref<1x256xf32, #tpu.memory_space<vmem>>, %arg3: memref<256x128xf32, #tpu.memory_space<vmem>>, %arg4: memref<256x128xf32, #tpu.memory_space<vmem>>, %arg5: memref<1x128xf32, #tpu.memory_space<vmem>>, %arg6: memref<128x128xf32, #tpu.memory_space<vmem>>, %arg7: memref<1x128xf32, #tpu.memory_space<vmem>>, %arg8: memref<8x128xf32, #tpu.memory_space<vmem>>) attributes {dimension_semantics = [#tpu.dimension_semantics<parallel>], iteration_bounds = array<i64: 2>, scalar_prefetch = 0 : i64, scratch_operands = 0 : i64, tpu.core_type = #tpu.core_type<tc>, window_params = [{transform_indices = @transform_0, window_bounds = array<i64: 8, 1>}, {pipeline_mode = #tpu.pipeline_mode<synchronous>, transform_indices = @transform_1, window_bounds = array<i64: 1, 256>}, {pipeline_mode = #tpu.pipeline_mode<synchronous>, transform_indices = @transform_2, window_bounds = array<i64: 256, 128>}, {pipeline_mode = #tpu.pipeline_mode<synchronous>, transform_indices = @transform_3, window_bounds = array<i64: 256, 128>}, {pipeline_mode = #tpu.pipeline_mode<synchronous>, transform_indices = @transform_4, window_bounds = array<i64: 1, 128>}, {pipeline_mode = #tpu.pipeline_mode<synchronous>, transform_indices = @transform_5, window_bounds = array<i64: 128, 128>}, {pipeline_mode = #tpu.pipeline_mode<synchronous>, transform_indices = @transform_6, window_bounds = array<i64: 1, 128>}, {transform_indices = @transform_7, window_bounds = array<i64: 8, 128>}]} {
    %c0 = arith.constant 0 : index
    %c0_0 = arith.constant 0 : index
    %0 = vector.load %arg1[%c0, %c0_0] : memref<8x1xf32, #tpu.memory_space<vmem>>, vector<8x1xf32>
    %c0_1 = arith.constant 0 : index
    %c0_2 = arith.constant 0 : index
    %1 = vector.load %arg2[%c0_1, %c0_2] : memref<1x256xf32, #tpu.memory_space<vmem>>, vector<1x256xf32>
    %2 = vector.broadcast %0 : vector<8x1xf32> to vector<8x256xf32>
    %3 = vector.broadcast %1 : vector<1x256xf32> to vector<8x256xf32>
    %4 = arith.mulf %2, %3 : vector<8x256xf32>
    %5 = math.cos %4 : vector<8x256xf32>
    %6 = math.sin %4 : vector<8x256xf32>
    %c0_3 = arith.constant 0 : index
    %c0_4 = arith.constant 0 : index
    %7 = vector.load %arg3[%c0_3, %c0_4] : memref<256x128xf32, #tpu.memory_space<vmem>>, vector<256x128xf32>
    %cst = arith.constant dense<0.000000e+00> : vector<8x128xf32>
    %8 = tpu.matmul %5, %7, %cst {dimension_numbers = #tpu.dot_dimension_numbers<[1], [0], [0], [1], [0, 0, 1, 1], [], []>} : vector<8x256xf32>, vector<256x128xf32>, vector<8x128xf32> -> vector<8x128xf32>
    %c0_5 = arith.constant 0 : index
    %c0_6 = arith.constant 0 : index
    %9 = vector.load %arg4[%c0_5, %c0_6] : memref<256x128xf32, #tpu.memory_space<vmem>>, vector<256x128xf32>
    %cst_7 = arith.constant dense<0.000000e+00> : vector<8x128xf32>
    %10 = tpu.matmul %6, %9, %cst_7 {dimension_numbers = #tpu.dot_dimension_numbers<[1], [0], [0], [1], [0, 0, 1, 1], [], []>} : vector<8x256xf32>, vector<256x128xf32>, vector<8x128xf32> -> vector<8x128xf32>
    %11 = arith.addf %8, %10 : vector<8x128xf32>
    %c0_8 = arith.constant 0 : index
    %c0_9 = arith.constant 0 : index
    %12 = vector.load %arg5[%c0_8, %c0_9] : memref<1x128xf32, #tpu.memory_space<vmem>>, vector<1x128xf32>
    %13 = vector.broadcast %12 : vector<1x128xf32> to vector<8x128xf32>
    %14 = arith.addf %11, %13 : vector<8x128xf32>
    %15 = arith.negf %14 : vector<8x128xf32>
    %16 = math.exp %15 : vector<8x128xf32>
    %cst_10 = arith.constant 1.000000e+00 : f32
    %17 = vector.broadcast %cst_10 : f32 to vector<8x128xf32>
    %18 = arith.addf %17, %16 : vector<8x128xf32>
    %19 = arith.divf %17, %18 : vector<8x128xf32>
    %20 = arith.mulf %14, %19 : vector<8x128xf32>
    %c0_11 = arith.constant 0 : index
    %c0_12 = arith.constant 0 : index
    %21 = vector.load %arg6[%c0_11, %c0_12] : memref<128x128xf32, #tpu.memory_space<vmem>>, vector<128x128xf32>
    %cst_13 = arith.constant dense<0.000000e+00> : vector<8x128xf32>
    %22 = tpu.matmul %20, %21, %cst_13 {dimension_numbers = #tpu.dot_dimension_numbers<[1], [0], [0], [1], [0, 0, 1, 1], [], []>} : vector<8x128xf32>, vector<128x128xf32>, vector<8x128xf32> -> vector<8x128xf32>
    %c0_14 = arith.constant 0 : index
    %c0_15 = arith.constant 0 : index
    %23 = vector.load %arg7[%c0_14, %c0_15] : memref<1x128xf32, #tpu.memory_space<vmem>>, vector<1x128xf32>
    %24 = vector.broadcast %23 : vector<1x128xf32> to vector<8x128xf32>
    %25 = arith.addf %22, %24 : vector<8x128xf32>
    %c0_16 = arith.constant 0 : index
    %c0_17 = arith.constant 0 : index
    %26 = vector.load %arg8[%c0_16, %c0_17] : memref<8x128xf32, #tpu.memory_space<vmem>>, vector<8x128xf32>
    tpu.vector_store %arg8[%c0_16, %c0_17], %25 {strides = array<i32>} : memref<8x128xf32, #tpu.memory_space<vmem>>, vector<8x128xf32>,
    return
  }
  func.func @transform_0(%arg0: i32) -> (i32, i32) {
    %c0_i32 = arith.constant 0 : i32
    %c0_i32_0 = arith.constant 0 : i32
    return %arg0, %c0_i32 : i32, i32
  }
  func.func @transform_1(%arg0: i32) -> (i32, i32) {
    %c0_i32 = arith.constant 0 : i32
    %c0_i32_0 = arith.constant 0 : i32
    %c0_i32_1 = arith.constant 0 : i32
    return %c0_i32, %c0_i32_0 : i32, i32
  }
  func.func @transform_2(%arg0: i32) -> (i32, i32) {
    %c0_i32 = arith.constant 0 : i32
    %c0_i32_0 = arith.constant 0 : i32
    %c0_i32_1 = arith.constant 0 : i32
    return %c0_i32, %c0_i32_0 : i32, i32
  }
  func.func @transform_3(%arg0: i32) -> (i32, i32) {
    %c0_i32 = arith.constant 0 : i32
    %c0_i32_0 = arith.constant 0 : i32
    %c0_i32_1 = arith.constant 0 : i32
    return %c0_i32, %c0_i32_0 : i32, i32
  }
  func.func @transform_4(%arg0: i32) -> (i32, i32) {
    %c0_i32 = arith.constant 0 : i32
    %c0_i32_0 = arith.constant 0 : i32
    %c0_i32_1 = arith.constant 0 : i32
    return %c0_i32, %c0_i32_0 : i32, i32
  }
  func.func @transform_5(%arg0: i32) -> (i32, i32) {
    %c0_i32 = arith.constant 0 : i32
    %c0_i32_0 = arith.constant 0 : i32
    %c0_i32_1 = arith.constant 0 : i32
    return %c0_i32, %c0_i32_0 : i32, i32
  }
  func.func @transform_6(%arg0: i32) -> (i32, i32) {
    %c0_i32 = arith.constant 0 : i32
    %c0_i32_0 = arith.constant 0 : i32
    %c0_i32_1 = arith.constant 0 : i32
    return %c0_i32, %c0_i32_0 : i32, i32
  }
  func.func @transform_7(%arg0: i32) -> (i32, i32) {
    %c0_i32 = arith.constant 0 : i32
    %c0_i32_0 = arith.constant 0 : i32
    return %arg0, %c0_i32 : i32, i32
  }
}

</mosaic_0001>

<bundles_post_ra>
// kernel: timestep_embedder.1
= control target key start
LH: loop header
LB: loop body
LE: loop exit
PB: predicated region body
PF: predicated region fallthrough
CT: control target
= control target key end

     0   :  { %12 = vsyncpa [#allocation3], 0  ;;  %s1874_s0 = inlined_call_operand.vmem [shape: f32[16,1], index: 0, kind: input, shape index: {}]   ;;  %s1875_s1 = inlined_call_operand.vmem [shape: f32[1,256], index: 1, kind: input, shape index: {}]   ;;  %s1876_s2 = inlined_call_operand.vmem [shape: f32[256,128], index: 2, kind: input, shape index: {}]   ;;  %s1877_s3 = inlined_call_operand.vmem [shape: f32[256,128], index: 3, kind: input, shape index: {}]   ;;  %s1878_s4 = inlined_call_operand.vmem [shape: f32[1,128], index: 4, kind: input, shape index: {}]   ;;  %s1879_s5 = inlined_call_operand.vmem [shape: f32[128,128], index: 5, kind: input, shape index: {}]   ;;  %s1880_s6 = inlined_call_operand.vmem [shape: f32[1,128], index: 6, kind: input, shape index: {}]   ;;  %s1881_s7 = inlined_call_operand.hbm [shape: f32[16,128], index: 7, kind: output, shape index: {}]  }
   0x1   :  { %14 = vsyncpa [#allocation3 + $0x1], 0  ;;  %s1426_s24 = smov 0   ;;  %s1428_s25 = smov 0  }
   0x2   :  { %s1430_s26 = smov 0   ;;  %s1432_s27 = smov 0  }
   0x3 LB: > { %s1447_s28 = sadd.s32 4294967295, %s1374_s27   ;;  %s1094_s29 = sadd.s32 4294967294, %s1374_s27   ;;  %s1374_s27 = sphi %s1432_s27, %s1889_s27   ;;  %s1370_s26 = sphi %s1430_s26, %s1888_s26   ;;  %s1366_s25 = sphi %s1428_s25, %s1887_s25   ;;  %s1362_s24 = sphi %s1426_s24, %s1886_s24  }
   0x4   : > { %s1451_s30 = sadd.s32 1, %s1374_s27   ;;  %s179_s8 = sadd.s32 1, %s1370_s26 }
   0x5   : > { %s176_s9 = ssub.s32 %s1374_s27, %s1451_s30  ;;  %p189_p0 = scmp.ne.s32.totalorder %s1370_s26, %s1366_s25 }
   0x6   : > { %p177_p1 = scmp.eq.s32.totalorder %s176_s9, 0  ;;  %p190_p2 = scmp.eq.s32.totalorder %s1447_s28, 1 }
   0x7   : > { %p195_p3 = scmp.ne.s32.totalorder %s1366_s25, %s1362_s24  ;;  %p196_p4 = scmp.eq.s32.totalorder %s1094_s29, 1 }
   0x8   : > { %s1462_s10 = scalar_select %p177_p1, %s1370_s26, %s179_s8  }
   0x9   : > { %p1464_p5 = por %p190_p2, %p189_p0  ;;  %p1468_p6 = por %p196_p4, %p195_p3 }
   0xa   : > { %p1097_p7 = scmp.ge.s32.totalorder %s1374_s27, 1  ;;  %p239_p8 = scmp.lt.s32.totalorder %s1374_s27, 3 }
   0xc   : > { %p240_p9 = pnand %p1097_p7, %p239_p8 }
   0xd   : > { %p270_p10 = scmp.lt.s32.totalorder (!%p240_p9), %s1447_s28, 1  ;;  %s1120_s18 = sshll.u32 (!%p240_p9), %s1447_s28, 7 }
   0xe   : > { %243 = sbr.rel (%p240_p9) target bundleno = 686 (0x2ae), region = 48  ;;  %s1839_s23 = scalar_lea.hbm (!%p240_p9), %s1881_s7, %s1120_s18 }
   0xf   : > { %s1385_s9 = smov (!%p240_p9), [#allocation2]  }
  0x13   : > { %v1376_v0 = vmov 0   ;;  %s271_s13 = scalar_select %p270_p10, %s1447_s28, 1  ;;  %v771_v2 = vld [vmem:[%s1877_s3 + $0xf8] sm:$0xff]  ;;  %v770_v6 = vld [vmem:[%s1877_s3 + $0xf0] sm:$0xff]  ;;  %v769_v10 = vld [vmem:[%s1877_s3 + $0xe8] sm:$0xff] }
  0x14   : > { %1301 = vset.pattern.permute.xlu0 %v1376_v0  ;;  %v739_v3 = vld [vmem:[%s1876_s2 + $0xf8] sm:$0xff]  ;;  %1123 = vmatprep.subr.mxu0 %v771_v2  ;;  %v738_v7 = vld [vmem:[%s1876_s2 + $0xf0] sm:$0xff]  ;;  %v737_v11 = vld [vmem:[%s1876_s2 + $0xe8] sm:$0xff]  ;;  %v282_v2 = vlaneseq  ;;  %s1318_s28 = sshll.u32 %s1385_s9, 4  ;;  %s1319_s28 = int_to_ptr.vmem [resolvable:$false] %s1318_s28 }
  0x15   : > { %s1099_s14 = sshll.u32 %s271_s13, 3  ;;  %1158 = vmatprep.subr.mxu1 %v739_v3  ;;  %v755_v4 = vld [vmem:[%s1877_s3 + $0x78] sm:$0xff]  ;;  %v754_v8 = vld [vmem:[%s1877_s3 + $0x70] sm:$0xff]  ;;  %v753_v12 = vld [vmem:[%s1877_s3 + $0x68] sm:$0xff]  ;;  %s1320_s13 = scalar_lea.vmem %s1319_s28, 256 }
  0x16   : > { %s273_s17 = scalar_lea.vmem %s1874_s0, %s1099_s14  ;;  %v723_v5 = vld [vmem:[%s1876_s2 + $0x78] sm:$0xff]  ;;  %1124 = vmatpush3.msra.mxu0 %v755_v4  ;;  %v722_v9 = vld [vmem:[%s1876_s2 + $0x70] sm:$0xff]  ;;  %v721_v13 = vld [vmem:[%s1876_s2 + $0x68] sm:$0xff]  ;;  %v283_v3 = vshrl.u32 %v282_v2, 7  ;;  %s267_s14 = sand.u32 1, %s1366_s25  }
  0x17   : > { %v274_v1 = vld [vmem:[%s273_s17] sm:$0xff]  ;;  %1159 = vmatpush3.msra.mxu1 %v723_v5  ;;  %1125 = vmatprep.subr.mxu0 %v770_v6  ;;  %v767_v18 = vld [vmem:[%s1877_s3 + $0xd8] sm:$0xff]  ;;  %v766_v22 = vld [vmem:[%s1877_s3 + $0xd0] sm:$0xff]  ;;  %s1098_s15 = sshll.u32 %s267_s14, 3  ;;  %s1022_s29 = scalar_lea.sflag [#allocation3], %s267_s14 }
  0x18   : > { %278 = vperm.xlu0 %1301, %v274_v1   ;;  %1160 = vmatprep.subr.mxu1 %v738_v7  ;;  %v768_v14 = vld [vmem:[%s1877_s3 + $0xe0] sm:$0xff]  ;;  %v735_v19 = vld [vmem:[%s1876_s2 + $0xd8] sm:$0xff]  ;;  %v734_v23 = vld [vmem:[%s1876_s2 + $0xd0] sm:$0xff]  ;;  %v284_v4 = vsub.s32 0, %v283_v3  ;;  %v288_v5 = vsub.s32 1, %v283_v3  ;;  %s269_s19 = scalar_lea.vmem [#allocation2], %s1098_s15 }
  0x19   : > { %1126 = vmatpush3.msra.mxu0 %v754_v8  ;;  %1161 = vmatpush3.msra.mxu1 %v722_v9  ;;  %v736_v15 = vld [vmem:[%s1876_s2 + $0xe0] sm:$0xff]  ;;  %v751_v20 = vld [vmem:[%s1877_s3 + $0x58] sm:$0xff]  ;;  %v750_v24 = vld [vmem:[%s1877_s3 + $0x50] sm:$0xff]  ;;  %s1035_s20 = sshll.u32 %s269_s19, 4  ;;  %s1036_s20 = int_to_ptr.vmem [resolvable:$true] %s1035_s20 }
  0x1a   : > { %1127 = vmatprep.subr.mxu0 %v769_v10  ;;  %1162 = vmatprep.subr.mxu1 %v737_v11  ;;  %v752_v16 = vld [vmem:[%s1877_s3 + $0x60] sm:$0xff]  ;;  %v719_v21 = vld [vmem:[%s1876_s2 + $0x58] sm:$0xff]  ;;  %v718_v25 = vld [vmem:[%s1876_s2 + $0x50] sm:$0xff]  ;;  %s1314_s8 = scalar_lea.vmem %s1036_s20, 128  ;;  %p1321_p0 = scmp.lt.s32.totalorder %s1036_s20, %s1319_s28 }
  0x1b   : > { %v720_v17 = vld [vmem:[%s1876_s2 + $0x60] sm:$0xff]  ;;  %1128 = vmatpush3.msra.mxu0 %v753_v12  ;;  %1163 = vmatpush3.msra.mxu1 %v721_v13  ;;  %v765_v26 = vld [vmem:[%s1877_s3 + $0xc8] sm:$0xff]  ;;  %v763_v34 = vld [vmem:[%s1877_s3 + $0xb8] sm:$0xff]  ;;  %p1315_p11 = scmp.ne.s32.totalorder %s1036_s20, %s1314_s8  ;;  %p1322_p1 = scmp.lt.s32.totalorder %s1320_s13, %s1314_s8 }
  0x1c   : > { %1129 = vmatprep.subr.mxu0 %v768_v14  ;;  %1164 = vmatprep.subr.mxu1 %v736_v15  ;;  %v733_v27 = vld [vmem:[%s1876_s2 + $0xc8] sm:$0xff]  ;;  %v764_v30 = vld [vmem:[%s1877_s3 + $0xc0] sm:$0xff]  ;;  %v731_v35 = vld [vmem:[%s1876_s2 + $0xb8] sm:$0xff] }
  0x1d   : > { %1130 = vmatpush3.msra.mxu0 %v752_v16  ;;  %1165 = vmatpush3.msra.mxu1 %v720_v17  ;;  %v749_v28 = vld [vmem:[%s1877_s3 + $0x48] sm:$0xff]  ;;  %v732_v31 = vld [vmem:[%s1876_s2 + $0xc0] sm:$0xff]  ;;  %v747_v36 = vld [vmem:[%s1877_s3 + $0x38] sm:$0xff]  ;;  %p1316_p12 = pnand %p1315_p11, %p1464_p5  ;;  %p1323_p2 = por %p1322_p1, %p1321_p0 }
  0x1e   : > { %1131 = vmatprep.subr.mxu0 %v767_v18  ;;  %1166 = vmatprep.subr.mxu1 %v735_v19  ;;  %v717_v29 = vld [vmem:[%s1876_s2 + $0x48] sm:$0xff]  ;;  %v748_v32 = vld [vmem:[%s1877_s3 + $0x40] sm:$0xff]  ;;  %v715_v37 = vld [vmem:[%s1876_s2 + $0x38] sm:$0xff] }
  0x1f   : > { %1132 = vmatpush3.msra.mxu0 %v751_v20  ;;  %1167 = vmatpush3.msra.mxu1 %v719_v21  ;;  %v716_v33 = vld [vmem:[%s1876_s2 + $0x40] sm:$0xff]  ;;  %v762_v38 = vld [vmem:[%s1877_s3 + $0xb0] sm:$0xff]  ;;  %v761_v42 = vld [vmem:[%s1877_s3 + $0xa8] sm:$0xff]  ;;  %p1317_p13 = pneg %p1316_p12 }
  0x20   : > { %1133 = vmatprep.subr.mxu0 %v766_v22  ;;  %1168 = vmatprep.subr.mxu1 %v734_v23  ;;  %v730_v39 = vld [vmem:[%s1876_s2 + $0xb0] sm:$0xff]  ;;  %v729_v43 = vld [vmem:[%s1876_s2 + $0xa8] sm:$0xff]  ;;  %v760_v46 = vld [vmem:[%s1877_s3 + $0xa0] sm:$0xff] }
  0x21   : > { %1134 = vmatpush3.msra.mxu0 %v750_v24  ;;  %1169 = vmatpush3.msra.mxu1 %v718_v25  ;;  %v746_v40 = vld [vmem:[%s1877_s3 + $0x30] sm:$0xff]  ;;  %v745_v44 = vld [vmem:[%s1877_s3 + $0x28] sm:$0xff]  ;;  %v728_v47 = vld [vmem:[%s1876_s2 + $0xa0] sm:$0xff]  ;;  %p1324_p3 = pnand %p1323_p2, %p1317_p13 }
  0x22   : > { %1135 = vmatprep.subr.mxu0 %v765_v26  ;;  %1170 = vmatprep.subr.mxu1 %v733_v27  ;;  %v714_v41 = vld [vmem:[%s1876_s2 + $0x30] sm:$0xff]  ;;  %v713_v45 = vld [vmem:[%s1876_s2 + $0x28] sm:$0xff]  ;;  %v744_v48 = vld [vmem:[%s1877_s3 + $0x20] sm:$0xff] }
  0x23   : > { %1136 = vmatpush3.msra.mxu0 %v749_v28  ;;  %1171 = vmatpush3.msra.mxu1 %v717_v29  ;;  %v712_v49 = vld [vmem:[%s1876_s2 + $0x20] sm:$0xff]  ;;  %v759_v50 = vld [vmem:[%s1877_s3 + $0x98] sm:$0xff]  ;;  %v758_v54 = vld [vmem:[%s1877_s3 + $0x90] sm:$0xff] }
  0x24   : > { %1137 = vmatprep.subr.mxu0 %v764_v30  ;;  %1172 = vmatprep.subr.mxu1 %v732_v31  ;;  %v727_v51 = vld [vmem:[%s1876_s2 + $0x98] sm:$0xff]  ;;  %v726_v55 = vld [vmem:[%s1876_s2 + $0x90] sm:$0xff]  ;;  %v757_v58 = vld [vmem:[%s1877_s3 + $0x88] sm:$0xff] }
  0x25   : > { %1138 = vmatpush3.msra.mxu0 %v748_v32  ;;  %1173 = vmatpush3.msra.mxu1 %v716_v33  ;;  %v743_v52 = vld [vmem:[%s1877_s3 + $0x18] sm:$0xff]  ;;  %v742_v56 = vld [vmem:[%s1877_s3 + $0x10] sm:$0xff]  ;;  %v725_v59 = vld [vmem:[%s1876_s2 + $0x88] sm:$0xff]  ;;  %v1377_v32 = vmov 683565275  }
  0x26   : > { %1139 = vmatprep.subr.mxu0 %v763_v34  ;;  %1174 = vmatprep.subr.mxu1 %v731_v35  ;;  %v711_v53 = vld [vmem:[%s1876_s2 + $0x18] sm:$0xff]  ;;  %v710_v57 = vld [vmem:[%s1876_s2 + $0x10] sm:$0xff]  ;;  %v741_v60 = vld [vmem:[%s1877_s3 + $0x8] sm:$0xff]  ;;  %v1378_v34 = vmov 2475754826  }
  0x27   : > { %1140 = vmatpush3.msra.mxu0 %v747_v36  ;;  %1175 = vmatpush3.msra.mxu1 %v715_v37  ;;  %v709_v61 = vld [vmem:[%s1876_s2 + $0x8] sm:$0xff]  ;;  %v756_v62 = vld [vmem:[%s1877_s3 + $0x80] sm:$0xff]  ;;  %v1379_v37 = vmov 2131351028  }
  0x28   : > { %1141 = vmatprep.subr.mxu0 %v762_v38  ;;  %1176 = vmatprep.subr.mxu1 %v730_v39  ;;  %v724_v63 = vld [vmem:[%s1876_s2 + $0x80] sm:$0xff]  ;;  %v1380_v39 = vmov 2102212464  }
  0x29   : > { %1142 = vmatpush3.msra.mxu0 %v746_v40  ;;  %1177 = vmatpush3.msra.mxu1 %v714_v41  ;;  %v740_v0 = vld [vmem:[%s1877_s3] sm:$0xff]  ;;  %v1381_v41 = vmov 920167782  }
  0x2a   : > { %1143 = vmatprep.subr.mxu0 %v761_v42  ;;  %1178 = vmatprep.subr.mxu1 %v729_v43  ;;  %v708_v1 = vld [vmem:[%s1876_s2] sm:$0xff] }
  0x2b   : > { %1144 = vmatpush3.msra.mxu0 %v745_v44  ;;  %1179 = vmatpush3.msra.mxu1 %v713_v45  ;;  %v275_v6 = vld [vmem:[%s1875_s1] sm:$0x3] }
  0x2c   : > { %1145 = vmatprep.subr.mxu0 %v760_v46  ;;  %1180 = vmatprep.subr.mxu1 %v728_v47  ;;  %v285_v7 = vrot.slane %v275_v6, %v284_v4  ;;  %v289_v8 = vrot.slane %v275_v6, %v288_v5 }
  0x2d   : > { %1146 = vmatpush3.msra.mxu0 %v744_v48  ;;  %1181 = vmatpush3.msra.mxu1 %v712_v49  ;;  %v1382_v48 = vmov 1326507024  }
  0x2e   : > { %1147 = vmatprep.subr.mxu0 %v759_v50  ;;  %1182 = vmatprep.subr.mxu1 %v727_v51 }
  0x2f   : > { %1148 = vmatpush3.msra.mxu0 %v743_v52  ;;  %1183 = vmatpush3.msra.mxu1 %v711_v53 }
  0x30   : > { %1149 = vmatprep.subr.mxu0 %v758_v54  ;;  %1184 = vmatprep.subr.mxu1 %v726_v55 }
  0x31   : > { %1150 = vmatpush3.msra.mxu0 %v742_v56  ;;  %1185 = vmatpush3.msra.mxu1 %v710_v57 }
  0x32   : > { %1151 = vmatprep.subr.mxu0 %v757_v58  ;;  %1186 = vmatprep.subr.mxu1 %v725_v59 }
  0x33   : > { %1152 = vmatpush3.msra.mxu0 %v741_v60  ;;  %1187 = vmatpush3.msra.mxu1 %v709_v61 }
  0x34   : > { %1153 = vmatprep.subr.mxu0 %v756_v62  ;;  %1188 = vmatprep.subr.mxu1 %v724_v63 }
  0x35   : > { %1154 = vmatpush3.msra.mxu0 %v740_v0  ;;  %1189 = vmatpush3.msra.mxu1 %v708_v1 }
  0x93   : > { %v279_v9 = vpop.permute.xlu0 %278 }
  0x94   : > { %v1674_v10 = vmul.f32 %v285_v7, %v279_v9  ;;  %v1676_v11 = vmul.f32 %v289_v8, %v279_v9 }
  0x96   : > { %v294_v12 = vand.u32 2147483647, %v1674_v10  ;;  %v297_v13 = vand.u32 2139095040, %v1674_v10  ;;  %v400_v14 = vand.u32 2139095040, %v1676_v11  ;;  %v397_v23 = vand.u32 2147483647, %v1676_v11 }
  0x97   : > { %vm296_vm14 = vcmp.lt.s32.totalorder %v1674_v10, 0 }
  0x98   : > { %v298_v15 = vshrl.u32 %v297_v13, 23  ;;  %v401_v16 = vshrl.u32 %v400_v14, 23  ;;  %v301_v17 = vand.u32 8388607, %v294_v12  ;;  %v1690_v30 = vand.u32 8388607, %v397_v23 }
  0x99   : > { %vm1753_vm15 = vcmp.le.f32.partialorder %v294_v12, 0.7853982 }
  0x9a   : > { %v1100_v18 = vadd.s32 4294967169, %v298_v15  ;;  %v1104_v19 = vadd.s32 4294967169, %v401_v16  ;;  %v302_v22 = vor.u32 8388608, %v301_v17 }
  0x9c   : > { %v304_v20 = vadd.s32 1, %v1100_v18  ;;  %v407_v21 = vadd.s32 1, %v1104_v19  ;;  %v1684_v28 = vshll.u32 %v302_v22, 8  ;;  %v405_v18 = vor.u32 8388608, %v1690_v30 }
  0x9e   : > { %vm305_vm0 = vcmp.gt.s32.totalorder %v304_v20, 0  ;;  %vm408_vm1 = vcmp.gt.s32.totalorder %v407_v21, 0 }
  0x9f   : > { %v306_v24 = vsel %vm305_vm0, %v304_v20, 0  ;;  %v409_v25 = vsel %vm408_vm1, %v407_v21, 0  ;;  %vm399_vm0 = vcmp.lt.s32.totalorder %v1676_v11, 0  ;;  %vm398_vm1 = vcmp.le.f32.partialorder %v397_v23, 0.7853982 }
  0xa0   : > { %v307_v26 = vshrl.u32 %v306_v24, 5  ;;  %v308_v27 = vand.u32 31, %v306_v24  ;;  %v1686_v29 = vshrl.u32 %v409_v25, 5  ;;  %v411_v36 = vand.u32 31, %v409_v25 }
  0xa2   : > { %v309_v31 = vsub.s32 32, %v308_v27  ;;  %v311_v33 = vshll.u32 %v1377_v32, %v308_v27  ;;  %v314_v35 = vshll.u32 %v1378_v34, %v308_v27  ;;  %v317_v38 = vshll.u32 %v1379_v37, %v308_v27 }
  0xa3   : > { %v320_v40 = vshll.u32 %v1380_v39, %v308_v27  ;;  %v323_v42 = vshll.u32 %v1381_v41, %v308_v27  ;;  %vm326_vm2 = vcmp.lt.s32.totalorder %v307_v26, 1  ;;  %vm327_vm3 = vcmp.lt.s32.totalorder %v307_v26, 2 }
  0xa4   : > { %v312_v43 = vshrl.u32 %v1378_v34, %v309_v31  ;;  %v315_v44 = vshrl.u32 %v1379_v37, %v309_v31  ;;  %v318_v45 = vshrl.u32 %v1380_v39, %v309_v31  ;;  %v310_v46 = vshrl.u32 %v1377_v32, %v309_v31 }
  0xa5   : > { %v321_v47 = vshrl.u32 %v1381_v41, %v309_v31  ;;  %v324_v49 = vshrl.u32 %v1382_v48, %v309_v31  ;;  %vm328_vm4 = vcmp.lt.s32.totalorder %v307_v26, 3  ;;  %v412_v53 = vsub.s32 32, %v411_v36 }
  0xa6   : > { %v313_v50 = vor.u32 %v312_v43, %v311_v33  ;;  %v316_v51 = vor.u32 %v315_v44, %v314_v35  ;;  %v319_v52 = vor.u32 %v318_v45, %v317_v38  ;;  %vm329_vm5 = vcmp.lt.s32.totalorder %v307_v26, 4 }
  0xa7   : > { %v322_v54 = vor.u32 %v321_v47, %v320_v40  ;;  %v325_v55 = vor.u32 %v324_v49, %v323_v42  ;;  %v423_v56 = vshll.u32 %v1380_v39, %v411_v36  ;;  %v424_v0 = vshrl.u32 %v1381_v41, %v412_v53 }
  0xa8   : > { %v330_v57 = vsel %vm326_vm2, %v310_v46, %v313_v50  ;;  %v331_v58 = vsel %vm329_vm5, %v319_v52, 2102212464  ;;  %v334_v59 = vsel %vm326_vm2, %v313_v50, %v316_v51  ;;  %v338_v60 = vsel %vm326_vm2, %v316_v51, %v319_v52 }
  0xa9   : > { %v332_v61 = vsel %vm328_vm4, %v316_v51, %v331_v58  ;;  %v335_v62 = vsel %vm329_vm5, %v322_v54, 920167782  ;;  %v339_v63 = vsel %vm329_vm5, %v325_v55, 1326507024  ;;  %v427_v4 = vshrl.u32 %v1382_v48, %v412_v53 }
  0xaa   : > { %v333_v1 = vsel %vm327_vm3, %v330_v57, %v332_v61  ;;  %v336_v2 = vsel %vm328_vm4, %v319_v52, %v335_v62  ;;  %v340_v3 = vsel %vm328_vm4, %v322_v54, %v339_v63  ;;  %v425_v7 = vor.u32 %v424_v0, %v423_v56 }
  0xab   : > { %v337_v5 = vsel %vm327_vm3, %v334_v59, %v336_v2  ;;  %v341_v6 = vsel %vm327_vm3, %v338_v60, %v340_v3  ;;  %v426_v8 = vshll.u32 %v1381_v41, %v411_v36  ;;  %v349_v16 = vmul.u32 %v1684_v28, %v333_v1 }
  0xac   : > { %v1704_v9 = vmul.u32.u64.low %v1684_v28, %v341_v6  ;;  %v1705_v13 = vmul.u32.u64.high %v1684_v28, %v341_v6, %v1704_v9  ;;  %v1708_v14 = vmul.u32.u64.low %v1684_v28, %v337_v5  ;;  %v1709_v15 = vmul.u32.u64.high %v1684_v28, %v337_v5, %v1708_v14 }
  0xad   : > { %v428_v17 = vor.u32 %v427_v4, %v426_v8  ;;  %vm432_vm6 = vcmp.lt.s32.totalorder %v1686_v29, 4  ;;  %v414_v19 = vshll.u32 %v1377_v32, %v411_v36  ;;  %v415_v20 = vshrl.u32 %v1378_v34, %v412_v53 }
  0xae   : > { %v418_v21 = vshrl.u32 %v1379_v37, %v412_v53  ;;  %v417_v24 = vshll.u32 %v1378_v34, %v411_v36  ;;  %v420_v25 = vshll.u32 %v1379_v37, %v411_v36  ;;  %v421_v26 = vshrl.u32 %v1380_v39, %v412_v53 }
  0xaf   : > { %v442_v22 = vsel %vm432_vm6, %v428_v17, 1326507024  ;;  %vm351_vm7 = vc.u32 %v1705_v13, %v1708_v14  ;;  %v352_v27 = vadd.s32 1, %v1709_v15  ;;  %v438_v28 = vsel %vm432_vm6, %v425_v7, 920167782 }
  0xb0   : > { %v416_v30 = vor.u32 %v415_v20, %v414_v19  ;;  %v413_v31 = vshrl.u32 %v1377_v32, %v412_v53  ;;  %v419_v33 = vor.u32 %v418_v21, %v417_v24  ;;  %v422_v35 = vor.u32 %v421_v26, %v420_v25 }
  0xb1   : > { %vm431_vm8 = vcmp.lt.s32.totalorder %v1686_v29, 3  ;;  %v353_v38 = vsel %vm351_vm7, %v352_v27, %v1709_v15  ;;  %vm429_vm9 = vcmp.lt.s32.totalorder %v1686_v29, 1  ;;  %vm430_vm10 = vcmp.lt.s32.totalorder %v1686_v29, 2 }
  0xb2   : > { %v443_v34 = vsel %vm431_vm8, %v425_v7, %v442_v22  ;;  %v354_v36 = vadd.s32 %v353_v38, %v349_v16  ;;  %v434_v37 = vsel %vm432_vm6, %v422_v35, 2102212464  ;;  %v437_v39 = vsel %vm429_vm9, %v416_v30, %v419_v33 }
  0xb3   : > { %v439_v40 = vsel %vm431_vm8, %v422_v35, %v438_v28  ;;  %v441_v41 = vsel %vm429_vm9, %v419_v33, %v422_v35  ;;  %v445_v42 = vshll.u32 %v405_v18, 8  ;;  %v433_v44 = vsel %vm429_vm9, %v413_v31, %v416_v30 }
  0xb4   : > { %v440_v32 = vsel %vm430_vm10, %v437_v39, %v439_v40  ;;  %v355_v43 = vadd.s32 536870912, %v354_v36  ;;  %v435_v45 = vsel %vm431_vm8, %v419_v33, %v434_v37  ;;  %v444_v46 = vsel %vm430_vm10, %v441_v41, %v443_v34 }
  0xb5   : > { %v1732_v47 = vmul.u32.u64.low %v445_v42, %v444_v46  ;;  %v1733_v48 = vmul.u32.u64.high %v445_v42, %v444_v46, %v1732_v47  ;;  %v1735_v49 = vmul.u32.u64.low %v445_v42, %v440_v32  ;;  %v1736_v50 = vmul.u32.u64.high %v445_v42, %v440_v32, %v1735_v49 }
  0xb6   : > { %v1738_v51 = vshrl.u32 %v355_v43, 30  ;;  %v436_v52 = vsel %vm430_vm10, %v433_v44, %v435_v45  ;;  %v350_v3 = vadd.s32 %v1708_v14, %v1705_v13  ;;  %vm489_vm6 = vweird.f32 %v1676_v11 }
  0xb7   : > { %vm454_vm11 = vc.u32 %v1733_v48, %v1735_v49  ;;  %v455_v54 = vadd.s32 1, %v1736_v50  ;;  %v452_v56 = vmul.u32 %v445_v42, %v436_v52  ;;  %v453_v26 = vadd.s32 %v1735_v49, %v1733_v48 }
  0xb8   : > { %v357_v53 = vshll.u32 %v1738_v51, 30  ;;  %v380_v32 = vsub.s32 4, %v1738_v51  ;;  %vm386_vm7 = vweird.f32 %v1674_v10 }
  0xb9   : > { %v456_v57 = vsel %vm454_vm11, %v455_v54, %v1736_v50 }
  0xba   : > { %v358_v55 = vsub.s32 %v354_v36, %v357_v53  ;;  %v457_v59 = vadd.s32 %v456_v57, %v452_v56  ;;  %v381_v12 = vsel %vm296_vm14, %v380_v32, %v1738_v51 }
  0xbb   : > { %v383_v46 = vsel %vm1753_vm15, 0, %v381_v12 }
  0xbc   : > { %v360_v58 = vsub.s32 0, %v358_v55  ;;  %v458_v61 = vadd.s32 536870912, %v457_v59  ;;  %v593_v48 = vadd.s32 3, %v383_v46  ;;  %v387_v53 = vand.u32 3, %v383_v46  ;;  %v1118_v46 = vld [vmem:[%s1880_s6] ss:$0 sm:$0xff] }
  0xbe   : > { %v1101_v60 = vmin.u32 %v360_v58, %v358_v55  ;;  %v459_v63 = vshrl.u32 %v458_v61, 30  ;;  %vm389_vm2 = vcmp.eq.s32.totalorder %v387_v53, 0  ;;  %vm392_vm5 = vcmp.eq.s32.totalorder %v387_v53, 2 }
  0xbf   : > { %vm388_vm10 = vcmp.lt.s32.totalorder %v387_v53, 2 }
  0xc0   : > { %v362_v62 = vclz %v1101_v60  ;;  %v460_v1 = vshll.u32 %v459_v63, 30  ;;  %v483_v43 = vsub.s32 4, %v459_v63 }
  0xc2   : > { %v1102_v0 = vadd.s32 4294967294, %v362_v62  ;;  %v461_v29 = vsub.s32 %v457_v59, %v460_v1  ;;  %v484_v47 = vsel %vm399_vm0, %v483_v43, %v459_v63 }
  0xc3   : > { %v486_v50 = vsel %vm398_vm1, 0, %v484_v47 }
  0xc4   : > { %vm1103_vm12 = vcmp.lt.s32.totalorder %v1102_v0, 0  ;;  %v463_v6 = vsub.s32 0, %v461_v29  ;;  %v697_v54 = vadd.s32 3, %v486_v50  ;;  %v490_v57 = vand.u32 3, %v486_v50 }
  0xc5   : > { %v365_v2 = vsel %vm1103_vm12, 0, %v1102_v0 }
  0xc6   : > { %v366_v4 = vsub.s32 32, %v365_v2  ;;  %v370_v5 = vsub.s32 4294967266, %v365_v2  ;;  %v367_v7 = vshll.u32 %v358_v55, %v365_v2  ;;  %v1105_v15 = vmin.u32 %v463_v6, %v461_v29 }
  0xc7   : > { %v594_v55 = vand.u32 3, %v593_v48  ;;  %v698_v23 = vand.u32 3, %v697_v54  ;;  %vm495_vm8 = vcmp.eq.s32.totalorder %v490_v57, 2 }
  0xc8   : > { %v368_v8 = vshrl.u32 %v350_v3, %v366_v4  ;;  %v371_v9 = vadd.s32 127, %v370_v5  ;;  %v465_v18 = vclz %v1105_v15 }
  0xc9   : > { %vm596_vm3 = vcmp.eq.s32.totalorder %v594_v55, 0  ;;  %vm599_vm4 = vcmp.eq.s32.totalorder %v594_v55, 2  ;;  %vm595_vm9 = vcmp.lt.s32.totalorder %v594_v55, 2  ;;  %vm703_vm11 = vcmp.eq.s32.totalorder %v698_v23, 2 }
  0xca   : > { %v369_v16 = vor.u32 %v368_v8, %v367_v7  ;;  %v372_v17 = vshll.u32 %v371_v9, 23  ;;  %v1106_v20 = vadd.s32 4294967294, %v465_v18  ;;  %vm700_vm12 = vcmp.eq.s32.totalorder %v698_v23, 0 }
  0xcb   : > { %v1383_v18 = vmov 0.0  }
  0xcc   : > { %v373_v19 = vor.u32 4788187, %v372_v17  ;;  %v376_v22 = vcvt.s32.f32 %v369_v16  ;;  %vm1107_vm13 = vcmp.lt.s32.totalorder %v1106_v20, 0  ;;  %1210 = vmatprep.subr.mxu0 %v1383_v18 }
  0xcd   : > { %v468_v24 = vsel %vm1107_vm13, 0, %v1106_v20  ;;  %vm492_vm13 = vcmp.eq.s32.totalorder %v490_v57, 0  ;;  %v939_v20 = vld [vmem:[%s1879_s5 + $0x60] sm:$0xff] }
  0xce   : > { %v374_v21 = vand.u32 2147483647, %v373_v19  ;;  %v469_v13 = vsub.s32 32, %v468_v24  ;;  %v473_v14 = vsub.s32 4294967266, %v468_v24  ;;  %v470_v28 = vshll.u32 %v461_v29, %v468_v24  ;;  %v942_v19 = vld [vmem:[%s1879_s5 + $0x78] sm:$0xff]  ;;  %v936_v24 = vld [vmem:[%s1879_s5 + $0x48] sm:$0xff] }
  0xd0   : > { %v377_v25 = vmul.f32 %v376_v22, %v374_v21  ;;  %v471_v30 = vshrl.u32 %v453_v26, %v469_v13  ;;  %v474_v31 = vadd.s32 127, %v473_v14  ;;  %v938_v21 = vld [vmem:[%s1879_s5 + $0x58] sm:$0xff]  ;;  %v937_v22 = vld [vmem:[%s1879_s5 + $0x50] sm:$0xff]  ;;  %v932_v14 = vld [vmem:[%s1879_s5 + $0x28] sm:$0xff] }
  0xd1   : > { %v934_v26 = vld [vmem:[%s1879_s5 + $0x38] sm:$0xff]  ;;  %v933_v13 = vld [vmem:[%s1879_s5 + $0x30] sm:$0xff] }
  0xd2   : > { %v378_v27 = vxor.u32 2147483648, %v377_v25  ;;  %v472_v35 = vor.u32 %v471_v30, %v470_v28  ;;  %v475_v38 = vshll.u32 %v474_v31, 23  ;;  %v930_v28 = vld [vmem:[%s1879_s5 + $0x18] sm:$0xff]  ;;  %v929_v30 = vld [vmem:[%s1879_s5 + $0x10] sm:$0xff]  ;;  %v928_v31 = vld [vmem:[%s1879_s5 + $0x8] sm:$0xff] }
  0xd4   : > { %v379_v33 = vsel %vm296_vm14, %v378_v27, %v377_v25  ;;  %v476_v37 = vor.u32 4788187, %v475_v38  ;;  %v479_v40 = vcvt.s32.f32 %v472_v35  ;;  %vm699_vm14 = vcmp.lt.s32.totalorder %v698_v23, 2  ;;  %v935_v25 = vld [vmem:[%s1879_s5 + $0x40] sm:$0xff] }
  0xd5   : > { %v382_v36 = vsel %vm1753_vm15, %v1674_v10, %v379_v33  ;;  %vm491_vm15 = vcmp.lt.s32.totalorder %v490_v57, 2  ;;  %v941_v10 = vld [vmem:[%s1879_s5 + $0x70] sm:$0xff]  ;;  %v931_v27 = vld [vmem:[%s1879_s5 + $0x20] sm:$0xff] }
  0xd6   : > { %1302 = vcosq.f32 %v382_v36  ;;  %v477_v39 = vand.u32 2147483647, %v476_v37  ;;  %v927_v33 = vld [vmem:[%s1879_s5] sm:$0xff] }
  0xd7   : > { %1304 = vsinq.f32 %v382_v36 }
  0xd8   : > { %v480_v41 = vmul.f32 %v479_v40, %v477_v39  ;;  %v1116_v40 = vld [vmem:[%s1878_s4] ss:$0 sm:$0xff] }
  0xda   : > { %v481_v42 = vxor.u32 2147483648, %v480_v41 }
  0xdc   : > { %v482_v44 = vsel %vm399_vm0, %v481_v42, %v480_v41  ;;  %vm1384_vm0 = vmmov 0  }
  0xdd   : > { %v485_v45 = vsel %vm398_vm1, %v1676_v11, %v482_v44  ;;  %v940_v11 = vld [vmem:[%s1879_s5 + $0x68] sm:$0xff] }
  0xde   : > { %1306 = vcosq.f32 %v485_v45 }
  0xdf   : > { %1308 = vsinq.f32 %v485_v45 }
  0xe3   : > { %v1303_v49 = vpop.eup %1302 }
  0xe4   : > { %v1305_v52 = vpop.eup %1304  ;;  %v393_v56 = vxor.u32 2147483648, %v1303_v49 }
  0xe5   : > { %v390_v51 = vxor.u32 2147483648, %v1305_v52 }
  0xe6   : > { %v601_v59 = vsel %vm599_vm4, %v393_v56, %v1305_v52  ;;  %v394_v61 = vsel %vm392_vm5, %v393_v56, %v1305_v52 }
  0xe7   : > { %v598_v58 = vsel %vm596_vm3, %v1303_v49, %v390_v51  ;;  %v391_v60 = vsel %vm389_vm2, %v1303_v49, %v390_v51 }
  0xe8   : > { %v602_v29 = vsel %vm595_vm9, %v598_v58, %v601_v59  ;;  %v395_v2 = vsel %vm388_vm10, %v391_v60, %v394_v61 }
  0xe9   : > { %v603_v9 = vsel %vm386_vm7, nan, %v602_v29  ;;  %v396_v15 = vsel %vm386_vm7, nan, %v395_v2 }
  0xeb   : > { %v1307_v62 = vpop.eup %1306 }
  0xec   : > { %v1309_v63 = vpop.eup %1308  ;;  %v496_v0 = vxor.u32 2147483648, %v1307_v62 }
  0xed   : > { %v493_v1 = vxor.u32 2147483648, %v1309_v63 }
  0xee   : > { %v705_v3 = vsel %vm703_vm11, %v496_v0, %v1309_v63  ;;  %v497_v4 = vsel %vm495_vm8, %v496_v0, %v1309_v63 }
  0xef   : > { %v702_v5 = vsel %vm700_vm12, %v1307_v62, %v493_v1  ;;  %v494_v6 = vsel %vm492_vm13, %v1307_v62, %v493_v1 }
  0xf0   : > { %v706_v7 = vsel %vm699_vm14, %v702_v5, %v705_v3  ;;  %v498_v8 = vsel %vm491_vm15, %v494_v6, %v497_v4 }
  0xf1   : > { %v707_v16 = vsel %vm489_vm6, nan, %v706_v7  ;;  %v499_v17 = vsel %vm489_vm6, nan, %v498_v8 }
  0xf2   : > { %836 = vmatprep.mubr.f32.mxu0 %v707_v16  ;;  %906 = vmatprep.mubr.f32.mxu1 %v499_v17 }
  0xf3   : > { %837 = vmatmul.mubr.f32.vlgmr.msra.gmra.mxu0 %v603_v9  ;;  %907 = vmatmul.mubr.f32.vlgmr.msra.gmra.mxu1 %v396_v15 }
  0xf4   : > { %1211 = vmatpush3.msra.mxu0 %v942_v19  ;;  %1242 = vmatprep.mubr.msk.f32.mxu0 %vm1384_vm0, %v1383_v18 }
  0xf5   : > { %1212 = vmatprep.subr.mxu0 %v1383_v18 }
  0xf6   : > { %1213 = vmatpush3.msra.mxu0 %v941_v10 }
  0xf7   : > { %1214 = vmatprep.subr.mxu0 %v1383_v18 }
  0xf8   : > { %1215 = vmatpush3.msra.mxu0 %v940_v11 }
  0xf9   : > { %1216 = vmatprep.subr.mxu0 %v1383_v18 }
  0xfa   : > { %1217 = vmatpush3.msra.mxu0 %v939_v20 }
  0xfb   : > { %1218 = vmatprep.subr.mxu0 %v1383_v18 }
  0xfc   : > { %1219 = vmatpush3.msra.mxu0 %v938_v21 }
  0xfd   : > { %1220 = vmatprep.subr.mxu0 %v1383_v18 }
  0xfe   : > { %1221 = vmatpush3.msra.mxu0 %v937_v22 }
  0xff   : > { %1222 = vmatprep.subr.mxu0 %v1383_v18 }
 0x100   : > { %1223 = vmatpush3.msra.mxu0 %v936_v24 }
 0x101   : > { %1224 = vmatprep.subr.mxu0 %v1383_v18 }
 0x102   : > { %1225 = vmatpush3.msra.mxu0 %v935_v25 }
 0x103   : > { %1226 = vmatprep.subr.mxu0 %v1383_v18 }
 0x104   : > { %1227 = vmatpush3.msra.mxu0 %v934_v26 }
 0x105   : > { %1228 = vmatprep.subr.mxu0 %v1383_v18 }
 0x106   : > { %1229 = vmatpush3.msra.mxu0 %v933_v13 }
 0x107   : > { %1230 = vmatprep.subr.mxu0 %v1383_v18 }
 0x108   : > { %1231 = vmatpush3.msra.mxu0 %v932_v14 }
 0x109   : > { %1232 = vmatprep.subr.mxu0 %v1383_v18 }
 0x10a   : > { %1233 = vmatpush3.msra.mxu0 %v931_v27 }
 0x10b   : > { %1234 = vmatprep.subr.mxu0 %v1383_v18 }
 0x10c   : > { %1235 = vmatpush3.msra.mxu0 %v930_v28 }
 0x10d   : > { %1236 = vmatprep.subr.mxu0 %v1383_v18 }
 0x10e   : > { %1237 = vmatpush3.msra.mxu0 %v929_v30 }
 0x10f   : > { %1238 = vmatprep.subr.mxu0 %v1383_v18 }
 0x110   : > { %1239 = vmatpush3.msra.mxu0 %v928_v31 }
 0x111   : > { %1240 = vmatprep.subr.mxu0 %v1383_v18 }
 0x112   : > { %1241 = vmatpush3.msra.mxu0 %v927_v33 }
 0x1b3   : > { %v1155_v35 = vpop.f32.mrf.mxu0  ;;  %v1190_v38 = vpop.f32.mrf.mxu1 }
 0x1b5   : > { %v1156_v34 = vpop.f32.mrf.mxu0  ;;  %v1191_v36 = vpop.f32.mrf.mxu1 }
 0x1b6   : > { %v1157_v37 = vadd.f32 %v1156_v34, %v1155_v35  ;;  %v1192_v39 = vadd.f32 %v1191_v36, %v1190_v38 }
 0x1b8   : > { %v909_v32 = vadd.f32 %v1192_v39, %v1157_v37 }
 0x1ba   : > { %v919_v41 = vadd.f32 %v1116_v40, %v909_v32 }
 0x1bc   : > { %v1117_v42 = vmul.f32 -1.442695, %v919_v41 }
 0x1be   : > { %1310 = vpow2.f32 %v1117_v42 }
 0x1cb   : > { %v1311_v43 = vpop.eup %1310 }
 0x1cc   : > { %v923_v12 = vadd.f32 1.0, %v1311_v43 }
 0x1ce   : > { %1312 = vrcp.f32 %v923_v12 }
 0x1db   : > { %v1313_v44 = vpop.eup %1312 }
 0x1dc   : > { %v926_v45 = vmul.f32 %v1313_v44, %v919_v41 }
 0x1de   : > { %1243 = vmatmul.mubr.f32.vlgmr.msra.gmra.mxu0 %v926_v45 }
 0x29e   : > { %v1016_v47 = vpop.f32.mrf.mxu0 }
 0x29f   : > { %v1017_v48 = vadd.f32 %v1118_v46, %v1016_v47 }
 0x2a0   : > { %v1244_v49 = vpop.f32.mrf.mxu0 }
 0x2a1   : > { %1020 = vst [vmem:[%s269_s19] sm:$0xff] %v1017_v48 }
 0x2a2   : > { %1327 = shalt.err (!%p1324_p3)
}
 0x2a3   : > { %s1328_s15 = scalar_lea.hbm %s1839_s23, 128  ;;  %s1332_s17 = scalar_lea.hbm %s1881_s7, 256 }
 0x2a4   : > { %p1329_p4 = scmp.ne.s32.totalorder %s1839_s23, %s1328_s15  ;;  %p1333_p9 = scmp.lt.s32.totalorder %s1839_s23, %s1881_s7 }
 0x2a5   : > { %p1334_p10 = scmp.lt.s32.totalorder %s1332_s17, %s1328_s15 }
 0x2a6   : > { %p1330_p7 = pnand %p1329_p4, %p1464_p5 }
 0x2a7   : > { %p1335_p11 = por %p1334_p10, %p1333_p9 }
 0x2a8   : > { %p1331_p8 = pneg %p1330_p7 }
 0x2aa   : > { %p1336_p12 = pnand %p1335_p11, %p1331_p8 }
 0x2ac   : > { %1339 = shalt.err (!%p1336_p12)
}
 0x2ad   : > { %1253 = dma.vmem_to_hbm [thread:$0]  (%p1464_p5), %s1036_s20, 128, %s1839_s23, %s1022_s29  }
 0x2ae PF: > { %p1259_p13 = scmp.ge.s32.totalorder %s1374_s27, 2  ;;  %s1047_s21 = sand.u32 1, %s1362_s24  }
 0x2af   : > { %s1048_s22 = scalar_lea.sflag [#allocation3], %s1047_s21 }
 0x2b0   : > { %p1256_p0 = pnand %p1259_p13, %p1468_p6 }
 0x2b2   : > { %p1257_p1 = pneg %p1256_p0 }
 0x2b4   : > { %1357 = dma.done.wait (%p1257_p1), %s1048_s22, 128  }
 0x2b5   : > { %1359 = vsyncadd (%p1257_p1), %s1048_s22, 4294967168  ;;  %p17_p2 = scmp.ge.s32.totalorder %s1451_s30, 4   ;;  %s1886_s24 = smov %s1366_s25 }
 0x2b6   : > { %s1887_s25 = smov %s1370_s26  ;;  %s1888_s26 = smov %s1462_s10 }
 0x2b7   : > { %s1889_s27 = smov %s1451_s30  ;;  %19 = sbr.rel (!%p17_p2) target bundleno = 3 (0x3), region = 83 }
 0x2bc   :  { %1053 = vsyncpa [#allocation3], 1 }
 0x2bd   :  { %1055 = vsyncpa [#allocation3 + $0x1], 1 }

</bundles_post_ra>
